<compile_context>
chip_gen: v7x
topology: tpu7x:2x2x1
jax: 0.10.0
libtpu: 0.0.40
codegen_flags: <defaults>
</compile_context>

<pallas_src>
import functools

import jax
import jax.numpy as jnp
from jax import lax
from jax.experimental import pallas as pl
from jax.experimental.pallas import tpu as pltpu


def _dwsep_kernel(x_ref, wf_ref, mask_ref, b_ref, o_ref, *, W, KH, KW, pad, TL):
    """One (batch, spatial-tile) grid step.

    x_ref   : (1, Cin, n_tiles + 2, TL)  flat-spatial input with a zero halo
                                         tile at each end; resident in VMEM
                                         across the spatial-tile grid axis.
    wf_ref  : (KH*KW, Cout, Cin)         per-tap fused depthwise*pointwise W.
    mask_ref: (KW, TL)                   column-validity masks per kw shift.
    b_ref   : (Cout, 1)                  fused bias.
    o_ref   : (1, Cout, TL)              lane-dense output tile.
    """
    i = pl.program_id(1)
    cout = o_ref.shape[1]

    # previous / current / next spatial tile (the zero halo tiles provide the
    # top / bottom image border)  ->  one contiguous strip (Cin, 3*TL)
    win = x_ref[0, :, pl.ds(i, 3), :]                        # (Cin, 3, TL)
    strip = jnp.concatenate(
        [win[:, 0, :], win[:, 1, :], win[:, 2, :]], axis=-1
    ).astype(jnp.float32)                                    # (Cin, 3*TL)

    # All 9 taps ride the MXU:  acc[o, p] += Wf_k[o, c] * x[c, p + off_k]
    # (for tiny Cin one could also stack the 9 patches into a (9*Cin, TL)
    #  RHS and issue a single dot; for realistic Cin the per-tap dots are
    #  already contraction-deep enough.)
    acc = jnp.zeros((cout, TL), dtype=jnp.float32)
    for kh in range(KH):
        for kw in range(KW):
            off = (kh - pad) * W + (kw - pad)
            patch = strip[:, TL + off: 2 * TL + off]         # (Cin, TL)
            if kw != pad:                                    # zero out-of-row cols
                patch = patch * mask_ref[kw:kw + 1, :]
            wk = wf_ref[kh * KW + kw].astype(jnp.float32)    # (Cout, Cin)
            acc = acc + jnp.dot(wk, patch,
                                preferred_element_type=jnp.float32)

    acc = acc + b_ref[...].astype(jnp.float32)               # fused dw+pw bias
    o_ref[0] = acc.astype(o_ref.dtype)


def _pick_tile_rows(H, W):
    """Rows per spatial tile.  The tile width th*W must be a multiple of 128
    (lane-dense, unmasked stores) and divide H evenly; prefer >= 2 tiles so the
    grid has enough steps to pipeline (and to feed both v7x TensorCores)."""
    cands = [t for t in range(1, H + 1) if H % t == 0 and (t * W) % 128 == 0]
    if not cands:
        return H                                   # fallback: one full-image tile
    multi = [t for t in cands if H // t >= 2] or cands
    capped = [t for t in multi if t * W <= 2048] or [min(multi)]
    return max(capped)


def depthwise_separable_conv(x_nchw, dw_w, dw_b, pw_w, pw_b,
                             *, stride=1, padding=1):
    """x_nchw: (N, Cin, H, W); dw_w: (Cin, 1, KH, KW); dw_b: (Cin,);
    pw_w: (Cout, Cin, 1, 1); pw_b: (Cout,).  Returns (N, Cout, H, W)."""
    assert stride == 1, "kernel implemented for stride=1 (module default)"
    N, Cin, H, W = x_nchw.shape
    KH, KW = dw_w.shape[2], dw_w.shape[3]
    Cout = pw_w.shape[0]
    # the flat-spatial shift/mask scheme assumes 'same' odd-kernel padding
    assert KH == KW and 2 * padding == KH - 1, "requires 'same' odd-kernel padding"

    th = _pick_tile_rows(H, W)
    TL = th * W                      # lanes per output tile (multiple of 128)
    n_tiles = H // th
    assert TL >= padding * (W + 1), "spatial tile too small for the halo"

    f32 = jnp.float32

    # ---- fold depthwise taps & bias into the pointwise weights (exact) ------
    taps = dw_w.reshape(Cin, KH * KW).astype(f32)              # [c, k]
    pw = pw_w.reshape(Cout, Cin).astype(f32)                   # [o, c]
    wf = pw[None, :, :] * jnp.transpose(taps)[:, None, :]      # (K, Cout, Cin)
    b_eff = (pw_b.astype(f32) + pw @ dw_b.astype(f32)).reshape(Cout, 1)

    # ---- column-validity masks for the kw = -pad..+pad lane shifts ----------
    cols = jnp.arange(TL, dtype=jnp.int32) % W
    masks = jnp.stack(
        [((cols + (kw - padding) >= 0) & (cols + (kw - padding) < W))
         for kw in range(KW)], axis=0).astype(f32)             # (KW, TL)

    # ---- input: NCHW -> (N, Cin, n_tiles + 2, TL) with zero halo tiles ------
    # (free reshapes + one small 1-D pad; no NHWC transpose, no 2-D pad)
    x_flat = x_nchw.reshape(N, Cin, H * W)
    x_tiles = jnp.pad(x_flat, ((0, 0), (0, 0), (TL, TL))).reshape(
        N, Cin, n_tiles + 2, TL)

    kernel = functools.partial(_dwsep_kernel, W=W, KH=KH, KW=KW,
                               pad=padding, TL=TL)

    out_flat = pl.pallas_call(
        kernel,
        out_shape=jax.ShapeDtypeStruct((N, Cout, n_tiles * TL), x_nchw.dtype),
        grid_spec=pltpu.PrefetchScalarGridSpec(
            num_scalar_prefetch=0,
            grid=(N, n_tiles),
            in_specs=[
                # whole (halo-padded) image stays resident in VMEM across the
                # spatial-tile axis (index_map ignores i -> no re-DMA per tile).
                # NOTE: for very large H*W, additionally tile this input with
                # halo'd strips to bound VMEM.
                pl.BlockSpec((1, Cin, n_tiles + 2, TL), lambda n, i: (n, 0, 0, 0)),
                pl.BlockSpec((KH * KW, Cout, Cin), lambda n, i: (0, 0, 0)),
                pl.BlockSpec((KW, TL), lambda n, i: (0, 0)),
                pl.BlockSpec((Cout, 1), lambda n, i: (0, 0)),
            ],
            out_specs=pl.BlockSpec((1, Cout, TL), lambda n, i: (n, 0, i)),
        ),
        compiler_params=pltpu.CompilerParams(
            dimension_semantics=("parallel", "parallel")),
    )(x_tiles, wf, masks, b_eff)

    # (N, Cout, H*W) -> (N, Cout, H, W): a free reshape, no transpose pass.
    return out_flat.reshape(N, Cout, H, W)


def _reference(x_nchw, dw_w, dw_b, pw_w, pw_b, padding=1):
    Cin = x_nchw.shape[1]
    dn = lax.conv_dimension_numbers(x_nchw.shape, dw_w.shape, ("NCHW", "OIHW", "NCHW"))
    y = lax.conv_general_dilated(x_nchw, dw_w, (1, 1),
                                 [(padding, padding), (padding, padding)],
                                 dimension_numbers=dn,
                                 feature_group_count=Cin)
    y = y + dw_b[None, :, None, None]
    dn2 = lax.conv_dimension_numbers(y.shape, pw_w.shape, ("NCHW", "OIHW", "NCHW"))
    z = lax.conv_general_dilated(y, pw_w, (1, 1), [(0, 0), (0, 0)],
                                 dimension_numbers=dn2)
    return z + pw_b[None, :, None, None]


if __name__ == "__main__":
    key = jax.random.PRNGKey(0)
    k1, k2, k3, k4, k5 = jax.random.split(key, 5)

    N, Cin, Cout, H, W, K = 2, 4, 8, 16, 16, 3

    x = jax.random.normal(k1, (N, Cin, H, W), dtype=jnp.float32)
    dw_w = jax.random.normal(k2, (Cin, 1, K, K), dtype=jnp.float32) * 0.1
    dw_b = jax.random.normal(k3, (Cin,), dtype=jnp.float32) * 0.1
    pw_w = jax.random.normal(k4, (Cout, Cin, 1, 1), dtype=jnp.float32) * 0.1
    pw_b = jax.random.normal(k5, (Cout,), dtype=jnp.float32) * 0.1

    out = depthwise_separable_conv(x, dw_w, dw_b, pw_w, pw_b)
    out = jax.block_until_ready(out)

    ref = _reference(x, dw_w, dw_b, pw_w, pw_b)
    assert out.shape == (N, Cout, H, W)
    assert jnp.allclose(out, ref, atol=1e-4, rtol=1e-4), "mismatch vs reference"

    print("KERNEL_OK")
</pallas_src>

<mosaic_0001>
module attributes {stable_mosaic.version = 11 : i64} {
  func.func @_dwsep_kernel(%arg0: i32, %arg1: i32, %arg2: memref<1x4x4x128xf32, #tpu.memory_space<vmem>>, %arg3: memref<9x8x4xf32, #tpu.memory_space<vmem>>, %arg4: memref<3x128xf32, #tpu.memory_space<vmem>>, %arg5: memref<8x1xf32, #tpu.memory_space<vmem>>, %arg6: memref<1x8x128xf32, #tpu.memory_space<vmem>>) attributes {dimension_semantics = [#tpu.dimension_semantics<parallel>, #tpu.dimension_semantics<parallel>], iteration_bounds = array<i64: 2, 2>, scalar_prefetch = 0 : i64, scratch_operands = 0 : i64, tpu.core_type = #tpu.core_type<tc>, window_params = [{transform_indices = @transform_0, window_bounds = array<i64: 1, 4, 4, 128>}, {pipeline_mode = #tpu.pipeline_mode<synchronous>, transform_indices = @transform_1, window_bounds = array<i64: 9, 8, 4>}, {pipeline_mode = #tpu.pipeline_mode<synchronous>, transform_indices = @transform_2, window_bounds = array<i64: 3, 128>}, {pipeline_mode = #tpu.pipeline_mode<synchronous>, transform_indices = @transform_3, window_bounds = array<i64: 8, 1>}, {transform_indices = @transform_4, window_bounds = array<i64: 1, 8, 128>}]} {
    %c0 = arith.constant 0 : index
    %c0_0 = arith.constant 0 : index
    %0 = arith.index_cast %arg1 : i32 to index
    %c0_1 = arith.constant 0 : index
    %1 = vector.load %arg2[%c0, %c0_0, %0, %c0_1] : memref<1x4x4x128xf32, #tpu.memory_space<vmem>>, vector<1x4x3x128xf32>
    %2 = vector.shape_cast %1 : vector<1x4x3x128xf32> to vector<4x3x128xf32>
    %3 = vector.extract_strided_slice %2 {offsets = [0, 0, 0], sizes = [4, 1, 128], strides = [1, 1, 1]} : vector<4x3x128xf32> to vector<4x1x128xf32>
    %4 = vector.shape_cast %3 : vector<4x1x128xf32> to vector<4x128xf32>
    %5 = vector.extract_strided_slice %2 {offsets = [0, 1, 0], sizes = [4, 1, 128], strides = [1, 1, 1]} : vector<4x3x128xf32> to vector<4x1x128xf32>
    %6 = vector.shape_cast %5 : vector<4x1x128xf32> to vector<4x128xf32>
    %7 = vector.extract_strided_slice %2 {offsets = [0, 2, 0], sizes = [4, 1, 128], strides = [1, 1, 1]} : vector<4x3x128xf32> to vector<4x1x128xf32>
    %8 = vector.shape_cast %7 : vector<4x1x128xf32> to vector<4x128xf32>
    %9 = tpu.concatenate %4, %6, %8 in 1 : vector<4x128xf32>, vector<4x128xf32>, vector<4x128xf32> -> vector<4x384xf32>
    %cst = arith.constant 0.000000e+00 : f32
    %10 = vector.broadcast %cst : f32 to vector<8x128xf32>
    %11 = vector.extract_strided_slice %9 {offsets = [0, 111], sizes = [4, 128], strides = [1, 1]} : vector<4x384xf32> to vector<4x128xf32>
    %c0_2 = arith.constant 0 : index
    %c0_3 = arith.constant 0 : index
    %12 = vector.load %arg4[%c0_2, %c0_3] : memref<3x128xf32, #tpu.memory_space<vmem>>, vector<1x128xf32>
    %13 = vector.broadcast %12 : vector<1x128xf32> to vector<4x128xf32>
    %14 = arith.mulf %11, %13 : vector<4x128xf32>
    %c0_4 = arith.constant 0 : index
    %c0_5 = arith.constant 0 : index
    %c0_6 = arith.constant 0 : index
    %15 = vector.load %arg3[%c0_4, %c0_5, %c0_6] : memref<9x8x4xf32, #tpu.memory_space<vmem>>, vector<1x8x4xf32>
    %16 = vector.shape_cast %15 : vector<1x8x4xf32> to vector<8x4xf32>
    %cst_7 = arith.constant dense<0.000000e+00> : vector<8x128xf32>
    %17 = tpu.matmul %16, %14, %cst_7 {dimension_numbers = #tpu.dot_dimension_numbers<[1], [0], [0], [1], [0, 0, 1, 1], [], []>} : vector<8x4xf32>, vector<4x128xf32>, vector<8x128xf32> -> vector<8x128xf32>
    %18 = arith.addf %10, %17 : vector<8x128xf32>
    %19 = vector.extract_strided_slice %9 {offsets = [0, 112], sizes = [4, 128], strides = [1, 1]} : vector<4x384xf32> to vector<4x128xf32>
    %c1 = arith.constant 1 : index
    %c0_8 = arith.constant 0 : index
    %c0_9 = arith.constant 0 : index
    %20 = vector.load %arg3[%c1, %c0_8, %c0_9] : memref<9x8x4xf32, #tpu.memory_space<vmem>>, vector<1x8x4xf32>
    %21 = vector.shape_cast %20 : vector<1x8x4xf32> to vector<8x4xf32>
    %cst_10 = arith.constant dense<0.000000e+00> : vector<8x128xf32>
    %22 = tpu.matmul %21, %19, %cst_10 {dimension_numbers = #tpu.dot_dimension_numbers<[1], [0], [0], [1], [0, 0, 1, 1], [], []>} : vector<8x4xf32>, vector<4x128xf32>, vector<8x128xf32> -> vector<8x128xf32>
    %23 = arith.addf %18, %22 : vector<8x128xf32>
    %24 = vector.extract_strided_slice %9 {offsets = [0, 113], sizes = [4, 128], strides = [1, 1]} : vector<4x384xf32> to vector<4x128xf32>
    %c2 = arith.constant 2 : index
    %c0_11 = arith.constant 0 : index
    %25 = vector.load %arg4[%c2, %c0_11] : memref<3x128xf32, #tpu.memory_space<vmem>>, vector<1x128xf32>
    %26 = vector.broadcast %25 : vector<1x128xf32> to vector<4x128xf32>
    %27 = arith.mulf %24, %26 : vector<4x128xf32>
    %c2_12 = arith.constant 2 : index
    %c0_13 = arith.constant 0 : index
    %c0_14 = arith.constant 0 : index
    %28 = vector.load %arg3[%c2_12, %c0_13, %c0_14] : memref<9x8x4xf32, #tpu.memory_space<vmem>>, vector<1x8x4xf32>
    %29 = vector.shape_cast %28 : vector<1x8x4xf32> to vector<8x4xf32>
    %cst_15 = arith.constant dense<0.000000e+00> : vector<8x128xf32>
    %30 = tpu.matmul %29, %27, %cst_15 {dimension_numbers = #tpu.dot_dimension_numbers<[1], [0], [0], [1], [0, 0, 1, 1], [], []>} : vector<8x4xf32>, vector<4x128xf32>, vector<8x128xf32> -> vector<8x128xf32>
    %31 = arith.addf %23, %30 : vector<8x128xf32>
    %32 = vector.extract_strided_slice %9 {offsets = [0, 127], sizes = [4, 128], strides = [1, 1]} : vector<4x384xf32> to vector<4x128xf32>
    %c0_16 = arith.constant 0 : index
    %c0_17 = arith.constant 0 : index
    %33 = vector.load %arg4[%c0_16, %c0_17] : memref<3x128xf32, #tpu.memory_space<vmem>>, vector<1x128xf32>
    %34 = vector.broadcast %33 : vector<1x128xf32> to vector<4x128xf32>
    %35 = arith.mulf %32, %34 : vector<4x128xf32>
    %c3 = arith.constant 3 : index
    %c0_18 = arith.constant 0 : index
    %c0_19 = arith.constant 0 : index
    %36 = vector.load %arg3[%c3, %c0_18, %c0_19] : memref<9x8x4xf32, #tpu.memory_space<vmem>>, vector<1x8x4xf32>
    %37 = vector.shape_cast %36 : vector<1x8x4xf32> to vector<8x4xf32>
    %cst_20 = arith.constant dense<0.000000e+00> : vector<8x128xf32>
    %38 = tpu.matmul %37, %35, %cst_20 {dimension_numbers = #tpu.dot_dimension_numbers<[1], [0], [0], [1], [0, 0, 1, 1], [], []>} : vector<8x4xf32>, vector<4x128xf32>, vector<8x128xf32> -> vector<8x128xf32>
    %39 = arith.addf %31, %38 : vector<8x128xf32>
    %40 = vector.extract_strided_slice %9 {offsets = [0, 128], sizes = [4, 128], strides = [1, 1]} : vector<4x384xf32> to vector<4x128xf32>
    %c4 = arith.constant 4 : index
    %c0_21 = arith.constant 0 : index
    %c0_22 = arith.constant 0 : index
    %41 = vector.load %arg3[%c4, %c0_21, %c0_22] : memref<9x8x4xf32, #tpu.memory_space<vmem>>, vector<1x8x4xf32>
    %42 = vector.shape_cast %41 : vector<1x8x4xf32> to vector<8x4xf32>
    %cst_23 = arith.constant dense<0.000000e+00> : vector<8x128xf32>
    %43 = tpu.matmul %42, %40, %cst_23 {dimension_numbers = #tpu.dot_dimension_numbers<[1], [0], [0], [1], [0, 0, 1, 1], [], []>} : vector<8x4xf32>, vector<4x128xf32>, vector<8x128xf32> -> vector<8x128xf32>
    %44 = arith.addf %39, %43 : vector<8x128xf32>
    %45 = vector.extract_strided_slice %9 {offsets = [0, 129], sizes = [4, 128], strides = [1, 1]} : vector<4x384xf32> to vector<4x128xf32>
    %c2_24 = arith.constant 2 : index
    %c0_25 = arith.constant 0 : index
    %46 = vector.load %arg4[%c2_24, %c0_25] : memref<3x128xf32, #tpu.memory_space<vmem>>, vector<1x128xf32>
    %47 = vector.broadcast %46 : vector<1x128xf32> to vector<4x128xf32>
    %48 = arith.mulf %45, %47 : vector<4x128xf32>
    %c5 = arith.constant 5 : index
    %c0_26 = arith.constant 0 : index
    %c0_27 = arith.constant 0 : index
    %49 = vector.load %arg3[%c5, %c0_26, %c0_27] : memref<9x8x4xf32, #tpu.memory_space<vmem>>, vector<1x8x4xf32>
    %50 = vector.shape_cast %49 : vector<1x8x4xf32> to vector<8x4xf32>
    %cst_28 = arith.constant dense<0.000000e+00> : vector<8x128xf32>
    %51 = tpu.matmul %50, %48, %cst_28 {dimension_numbers = #tpu.dot_dimension_numbers<[1], [0], [0], [1], [0, 0, 1, 1], [], []>} : vector<8x4xf32>, vector<4x128xf32>, vector<8x128xf32> -> vector<8x128xf32>
    %52 = arith.addf %44, %51 : vector<8x128xf32>
    %53 = vector.extract_strided_slice %9 {offsets = [0, 143], sizes = [4, 128], strides = [1, 1]} : vector<4x384xf32> to vector<4x128xf32>
    %c0_29 = arith.constant 0 : index
    %c0_30 = arith.constant 0 : index
    %54 = vector.load %arg4[%c0_29, %c0_30] : memref<3x128xf32, #tpu.memory_space<vmem>>, vector<1x128xf32>
    %55 = vector.broadcast %54 : vector<1x128xf32> to vector<4x128xf32>
    %56 = arith.mulf %53, %55 : vector<4x128xf32>
    %c6 = arith.constant 6 : index
    %c0_31 = arith.constant 0 : index
    %c0_32 = arith.constant 0 : index
    %57 = vector.load %arg3[%c6, %c0_31, %c0_32] : memref<9x8x4xf32, #tpu.memory_space<vmem>>, vector<1x8x4xf32>
    %58 = vector.shape_cast %57 : vector<1x8x4xf32> to vector<8x4xf32>
    %cst_33 = arith.constant dense<0.000000e+00> : vector<8x128xf32>
    %59 = tpu.matmul %58, %56, %cst_33 {dimension_numbers = #tpu.dot_dimension_numbers<[1], [0], [0], [1], [0, 0, 1, 1], [], []>} : vector<8x4xf32>, vector<4x128xf32>, vector<8x128xf32> -> vector<8x128xf32>
    %60 = arith.addf %52, %59 : vector<8x128xf32>
    %61 = vector.extract_strided_slice %9 {offsets = [0, 144], sizes = [4, 128], strides = [1, 1]} : vector<4x384xf32> to vector<4x128xf32>
    %c7 = arith.constant 7 : index
    %c0_34 = arith.constant 0 : index
    %c0_35 = arith.constant 0 : index
    %62 = vector.load %arg3[%c7, %c0_34, %c0_35] : memref<9x8x4xf32, #tpu.memory_space<vmem>>, vector<1x8x4xf32>
    %63 = vector.shape_cast %62 : vector<1x8x4xf32> to vector<8x4xf32>
    %cst_36 = arith.constant dense<0.000000e+00> : vector<8x128xf32>
    %64 = tpu.matmul %63, %61, %cst_36 {dimension_numbers = #tpu.dot_dimension_numbers<[1], [0], [0], [1], [0, 0, 1, 1], [], []>} : vector<8x4xf32>, vector<4x128xf32>, vector<8x128xf32> -> vector<8x128xf32>
    %65 = arith.addf %60, %64 : vector<8x128xf32>
    %66 = vector.extract_strided_slice %9 {offsets = [0, 145], sizes = [4, 128], strides = [1, 1]} : vector<4x384xf32> to vector<4x128xf32>
    %c2_37 = arith.constant 2 : index
    %c0_38 = arith.constant 0 : index
    %67 = vector.load %arg4[%c2_37, %c0_38] : memref<3x128xf32, #tpu.memory_space<vmem>>, vector<1x128xf32>
    %68 = vector.broadcast %67 : vector<1x128xf32> to vector<4x128xf32>
    %69 = arith.mulf %66, %68 : vector<4x128xf32>
    %c8 = arith.constant 8 : index
    %c0_39 = arith.constant 0 : index
    %c0_40 = arith.constant 0 : index
    %70 = vector.load %arg3[%c8, %c0_39, %c0_40] : memref<9x8x4xf32, #tpu.memory_space<vmem>>, vector<1x8x4xf32>
    %71 = vector.shape_cast %70 : vector<1x8x4xf32> to vector<8x4xf32>
    %cst_41 = arith.constant dense<0.000000e+00> : vector<8x128xf32>
    %72 = tpu.matmul %71, %69, %cst_41 {dimension_numbers = #tpu.dot_dimension_numbers<[1], [0], [0], [1], [0, 0, 1, 1], [], []>} : vector<8x4xf32>, vector<4x128xf32>, vector<8x128xf32> -> vector<8x128xf32>
    %73 = arith.addf %65, %72 : vector<8x128xf32>
    %c0_42 = arith.constant 0 : index
    %c0_43 = arith.constant 0 : index
    %74 = vector.load %arg5[%c0_42, %c0_43] : memref<8x1xf32, #tpu.memory_space<vmem>>, vector<8x1xf32>
    %75 = vector.broadcast %74 : vector<8x1xf32> to vector<8x128xf32>
    %76 = arith.addf %73, %75 : vector<8x128xf32>
    %c0_44 = arith.constant 0 : index
    %c0_45 = arith.constant 0 : index
    %c0_46 = arith.constant 0 : index
    %77 = vector.load %arg6[%c0_44, %c0_45, %c0_46] : memref<1x8x128xf32, #tpu.memory_space<vmem>>, vector<1x8x128xf32>
    %78 = vector.shape_cast %77 : vector<1x8x128xf32> to vector<8x128xf32>
    %79 = vector.shape_cast %76 : vector<8x128xf32> to vector<1x8x128xf32>
    tpu.vector_store %arg6[%c0_44, %c0_45, %c0_46], %79 {strides = array<i32>} : memref<1x8x128xf32, #tpu.memory_space<vmem>>, vector<1x8x128xf32>,
    return
  }
  func.func @transform_0(%arg0: i32, %arg1: i32) -> (i32, i32, i32, i32) {
    %c0_i32 = arith.constant 0 : i32
    %c0_i32_0 = arith.constant 0 : i32
    %c0_i32_1 = arith.constant 0 : i32
    %c0_i32_2 = arith.constant 0 : i32
    return %arg0, %c0_i32, %c0_i32_0, %c0_i32_1 : i32, i32, i32, i32
  }
  func.func @transform_1(%arg0: i32, %arg1: i32) -> (i32, i32, i32) {
    %c0_i32 = arith.constant 0 : i32
    %c0_i32_0 = arith.constant 0 : i32
    %c0_i32_1 = arith.constant 0 : i32
    %c0_i32_2 = arith.constant 0 : i32
    return %c0_i32, %c0_i32_0, %c0_i32_1 : i32, i32, i32
  }
  func.func @transform_2(%arg0: i32, %arg1: i32) -> (i32, i32) {
    %c0_i32 = arith.constant 0 : i32
    %c0_i32_0 = arith.constant 0 : i32
    %c0_i32_1 = arith.constant 0 : i32
    return %c0_i32, %c0_i32_0 : i32, i32
  }
  func.func @transform_3(%arg0: i32, %arg1: i32) -> (i32, i32) {
    %c0_i32 = arith.constant 0 : i32
    %c0_i32_0 = arith.constant 0 : i32
    %c0_i32_1 = arith.constant 0 : i32
    return %c0_i32, %c0_i32_0 : i32, i32
  }
  func.func @transform_4(%arg0: i32, %arg1: i32) -> (i32, i32, i32) {
    %c0_i32 = arith.constant 0 : i32
    %c0_i32_0 = arith.constant 0 : i32
    return %arg0, %c0_i32, %arg1 : i32, i32, i32
  }
}

</mosaic_0001>

<bundles_post_ra>
// kernel: tpu_custom_call.1
= control target key start
LH: loop header
LB: loop body
LE: loop exit
PB: predicated region body
PF: predicated region fallthrough
CT: control target
= control target key end

     0   :  { %9 = vsyncpa [#allocation3], 0  ;;  %s1719_s0 = inlined_call_operand.vmem [shape: f32[2,4,4,128], index: 0, kind: input, shape index: {}]   ;;  %s1720_s1 = inlined_call_operand.vmem [shape: f32[9,8,4], index: 1, kind: input, shape index: {}]   ;;  %s1721_s2 = inlined_call_operand.vmem [shape: f32[3,128], index: 2, kind: input, shape index: {}]   ;;  %s1722_s3 = inlined_call_operand.vmem [shape: f32[8,1], index: 3, kind: input, shape index: {}]   ;;  %s1723_s4 = inlined_call_operand.hbm [shape: f32[2,8,256], index: 4, kind: output, shape index: {}]  }
   0x1   :  { %11 = vsyncpa [#allocation3 + $0x1], 0  ;;  %s1464_s15 = smov 0   ;;  %s1466_s16 = smov 0  }
   0x2   :  { %s1468_s17 = smov 0   ;;  %s1470_s18 = smov 0  }
   0x3   :  { %s1472_s19 = smov 0   ;;  %s1474_s20 = smov 0  }
   0x4   :  { %s1476_s21 = smov 0   ;;  %s1478_s22 = smov 0  }
   0x5 LB: > { %s1143_s23 = sadd.s32 4294967295, %s1425_s22   ;;  %s1144_s24 = sadd.s32 4294967294, %s1425_s22   ;;  %s1425_s22 = sphi %s1478_s22, %s17_s22   ;;  %s1421_s21 = sphi %s1476_s21, %s1732_s21   ;;  %s1417_s20 = sphi %s1474_s20, %s1731_s20   ;;  %s1413_s19 = sphi %s1472_s19, %s1730_s19   ;;  %s1409_s18 = sphi %s1470_s18, %s1729_s18   ;;  %s1405_s17 = sphi %s1468_s17, %s1728_s17   ;;  %s1401_s16 = sphi %s1466_s16, %s1727_s16   ;;  %s1397_s15 = sphi %s1464_s15, %s1726_s15  }
   0x6   : > { %s26_s25 = sadd.s32 1, %s1417_s20  ;;  %s29_s26 = sadd.s32 1, %s1421_s21 }
   0x7   : > { %p27_p0 = scmp.ge.s32.totalorder %s26_s25, 2  ;;  %p137_p1 = scmp.ne.s32.totalorder %s1405_s17, %s1401_s16 }
   0x8   : > { %p138_p2 = scmp.eq.s32.totalorder %s1143_s23, 3  ;;  %p143_p5 = scmp.ne.s32.totalorder %s1401_s16, %s1397_s15 }
   0x9   : > { %s1734_s25 = smov (%p27_p0, %s26_s25), 0  ;;  %s1736_s26 = smov (!%p27_p0, %s29_s26), %s1421_s21 }
   0xa   : > { %s123_s27 = ssub.s32 %s1417_s20, %s1734_s25  ;;  %p1515_p3 = por %p138_p2, %p137_p1 }
   0xb   : > { %p31_p4 = scmp.ge.s32.totalorder %s1736_s26, 2  ;;  %p144_p6 = scmp.eq.s32.totalorder %s1144_s24, 3 }
   0xc   : > { %p1147_p7 = scmp.ge.s32.totalorder %s1425_s22, 1  ;;  %p179_p9 = scmp.lt.s32.totalorder %s1425_s22, 5 }
   0xd   : > { %s1738_s26 = smov (%p31_p4, %s1736_s26), 0  ;;  %p1524_p8 = por %p144_p6, %p143_p5 }
   0xe   : > { %s122_s30 = ssub.s32 %s1421_s21, %s1738_s26  ;;  %s127_s5 = sadd.s32 1, %s1405_s17 }
   0xf   : > { %s124_s6 = sor.u32 %s123_s27, %s122_s30  ;;  %p180_p10 = pnand %p1147_p7, %p179_p9 }
  0x10   : > { %p125_p11 = scmp.eq.s32.totalorder %s124_s6, 0  ;;  %v1151_v0 = vld [vmem:[%s1721_s2] ss:$0 sm:$0xff] (!%p180_p10)  ;;  %s1427_s10 = smov (!%p180_p10), 111   ;;  %v1157_v1 = vld [vmem:[%s1721_s2 + $0x2] ss:$0 sm:$0xff] (!%p180_p10) }
  0x11   : > { %183 = sbr.rel (%p180_p10) target bundleno = 501 (0x1f5), region = 36  ;;  %249 = vrot.lane.b32.xlu0 (!%p180_p10), %v1151_v0, %s1427_s10  ;;  %s1428_s13 = smov (!%p180_p10), 127   ;;  %vm220_vm0 = vcmask (!%p180_p10), 1041409   ;;  %vm223_vm1 = vcmask (!%p180_p10), 1042434   ;;  %vm226_vm2 = vcmask (!%p180_p10), 1043459   ;;  %v1433_v20 = vmov (!%p180_p10), 0.0  }
  0x12   : > { %s1533_s7 = scalar_select %p125_p11, %s1405_s17, %s127_s5  }
  0x13   : > { %520 = vrot.lane.b32.xlu1 (!%p180_p10), %v1151_v0, %s1428_s13  ;;  %p205_p12 = scmp.lt.s32.totalorder (!%p180_p10), %s1413_s19, 1  ;;  %s1429_s14 = smov (!%p180_p10), 113   ;;  %1203 = vmatprep.subr.mxu0 (!%p180_p10), %v1433_v20  ;;  %vm1436_vm3 = vmmov (!%p180_p10), 0   ;;  %vm261_vm4 = vcmask (!%p180_p10), 130048   ;;  %v1437_v39 = vmov (!%p180_p10), 0   ;;  %vm267_vm5 = vcmask (!%p180_p10), 1043456  }
  0x14   : > { %s1430_s24 = smov (!%p180_p10), 1   ;;  %s1431_s8 = smov (!%p180_p10), 15   ;;  %1208 = vmatprep.subr.mxu1 (!%p180_p10), %v1433_v20  ;;  %1205 = vmatprep.mubr.msk.f32.mxu0 (!%p180_p10), %vm1436_vm3, %v1433_v20  ;;  %v1152_v44 = vld [vmem:[%s1720_s1 + $0x8] sm:$0xff] (!%p180_p10)  ;;  %vm263_vm6 = vcmask (!%p180_p10), 31744   ;;  %v1046_v48 = vld [vmem:[%s1722_s3] sm:$0xff] (!%p180_p10)  ;;  %vm346_vm7 = vcmask (!%p180_p10), 138240  }
  0x15   : > { %429 = vrot.lane.b32.xlu0 (!%p180_p10), %v1157_v1, %s1429_s14  ;;  %s1432_s11 = smov (!%p180_p10), 17   ;;  %s1434_s12 = smov (!%p180_p10), 16   ;;  %1210 = vmatprep.mubr.msk.f32.mxu1 (!%p180_p10), %vm1436_vm3, %v1433_v20  ;;  %v254_v53 = vld [vmem:[%s1720_s1] sm:$0xff] (!%p180_p10)  ;;  %vm442_vm8 = vcmask (!%p180_p10), 121856   ;;  %v1158_v57 = vld [vmem:[%s1720_s1 + $0x10] sm:$0xff] (!%p180_p10)  ;;  %vm533_vm9 = vcmask (!%p180_p10), 7168  }
  0x16   : > { %1330 = vset.pattern.permute.xlu0 (!%p180_p10), %v1437_v39  ;;  %v1161_v61 = vld [vmem:[%s1720_s1 + $0x18] sm:$0xff] (!%p180_p10)  ;;  %v1164_v63 = vld [vmem:[%s1720_s1 + $0x20] sm:$0xff] (!%p180_p10)  ;;  %vm702_vm10 = vcmask (!%p180_p10), 1039360   ;;  %vm877_vm11 = vcmask (!%p180_p10), 916480   ;;  %vm793_vm12 = vcmask (!%p180_p10), 924672   ;;  %vm968_vm13 = vcmask (!%p180_p10), 908288  }
  0x17   : > { %689 = vrot.lane.b32.xlu1 (!%p180_p10), %v1157_v1, %s1430_s24 }
  0x18   : > { %s206_s23 = scalar_select %p205_p12, %s1413_s19, 1 }
  0x19   : > { %780 = vrot.lane.b32.xlu0 %v1151_v0, %s1431_s8 }
  0x1a   : > { %s1184_s27 = sshll.u32 %s206_s23, 4  ;;  %s1435_s23 = smov 112  }
  0x1b   : > { %s209_s6 = scalar_lea.vmem %s1719_s0, %s1184_s27  ;;  %955 = vrot.lane.b32.xlu1 %v1157_v1, %s1432_s11 }
  0x1c   : > { %s210_s9 = scalar_lea.vmem %s209_s6, %s1409_s18  ;;  %s202_s6 = sand.u32 1, %s1401_s16  }
  0x1d   : > { %v211_v2 = vld [vmem:[%s210_s9] sm:$0x7]  ;;  %v212_v3 = vld [vmem:[%s210_s9 + $0x4] sm:$0x7]  ;;  %v213_v4 = vld [vmem:[%s210_s9 + $0x8] sm:$0x7] }
  0x1e   : > { %v214_v5 = vld [vmem:[%s210_s9 + $0xc] sm:$0x7]  ;;  %v229_v6 = vrot.slane %v211_v2, 1  ;;  %v231_v7 = vrot.slane %v213_v4, 7  ;;  %v219_v8 = vrot.slane %v212_v3, 7  ;;  %v222_v9 = vrot.slane %v213_v4, 6 }
  0x1f   : > { %v233_v10 = vrot.slane %v214_v5, 6  ;;  %v225_v11 = vrot.slane %v214_v5, 5  ;;  %v236_v12 = vrot.slane %v211_v2, 2  ;;  %v237_v13 = vrot.slane %v212_v3, 1  ;;  %s1180_s9 = sshll.u32 %s1413_s19, 1 }
  0x20   : > { %v230_v14 = vsel %vm220_vm0, %v212_v3, %v229_v6  ;;  %v221_v15 = vsel %vm220_vm0, %v219_v8, %v211_v2  ;;  %v240_v16 = vrot.slane %v214_v5, 7  ;;  %v1167_v2 = vld [vmem:[%s1720_s1 + $0x28] sm:$0xff] }
  0x21   : > { %v232_v17 = vsel %vm223_vm1, %v231_v7, %v230_v14  ;;  %v224_v18 = vsel %vm223_vm1, %v222_v9, %v221_v15  ;;  %v238_v19 = vsel %vm220_vm0, %v237_v13, %v236_v12  ;;  %v1170_v7 = vld [vmem:[%s1720_s1 + $0x30] sm:$0xff]  ;;  %v1173_v9 = vld [vmem:[%s1720_s1 + $0x38] sm:$0xff]  ;;  %v1176_v12 = vld [vmem:[%s1720_s1 + $0x40] sm:$0xff] }
  0x22   : > { %v1561_v21 = vsel %vm226_vm2, %v233_v10, %v232_v17  ;;  %v227_v22 = vsel %vm226_vm2, %v225_v11, %v224_v18  ;;  %v239_v23 = vsel %vm223_vm1, %v213_v4, %v238_v19 }
  0x23   : > { %259 = vrot.lane.b32.xlu1 %v1561_v21, %s1434_s12  ;;  %257 = vrot.lane.b32.xlu0 %v227_v22, %s1434_s12  ;;  %v241_v24 = vsel %vm226_vm2, %v240_v16, %v239_v23 }
  0x27   : > { %875 = vrot.lane.b32.xlu1 %v241_v24, %s1435_s23  ;;  %873 = vrot.lane.b32.xlu0 %v1561_v21, %s1435_s23 }
  0x83   : > { %v250_v25 = vpop.permute.xlu0 %249 }
  0x84   : > { %v252_v26 = vmul.f32 %v250_v25, %v227_v22  ;;  %v253_v27 = vmul.f32 %v250_v25, %v1561_v21 }
  0x85   : > { %v521_v28 = vpop.permute.xlu1 %520 }
  0x86   : > { %344 = vrot.lane.b32.xlu1 %v253_v27, %s1432_s11  ;;  %342 = vrot.lane.b32.xlu0 %v252_v26, %s1432_s11  ;;  %v523_v32 = vmul.f32 %v521_v28, %v227_v22  ;;  %v524_v33 = vmul.f32 %v521_v28, %v1561_v21  ;;  %s1066_s11 = sadd.s32 %s1409_s18, %s1180_s9  ;;  %s1055_s18 = scalar_lea.sflag [#allocation3], %s202_s6 }
  0x87   : > { %v430_v29 = vpop.permute.xlu0 %429  ;;  %s1181_s12 = sshll.u32 %s1066_s11, 7 }
  0x88   : > { %v432_v30 = vmul.f32 %v430_v29, %v227_v22  ;;  %v433_v31 = vmul.f32 %v430_v29, %v1561_v21  ;;  %s1666_s19 = scalar_lea.hbm %s1723_s4, %s1181_s12 }
  0x89   : > { %v690_v34 = vpop.permute.xlu1 %689 }
  0x8a   : > { %440 = vrot.lane.b32.xlu1 %v433_v31, %s1431_s8  ;;  %438 = vrot.lane.b32.xlu0 %v432_v30, %s1431_s8  ;;  %v692_v35 = vmul.f32 %v690_v34, %v1561_v21  ;;  %v693_v36 = vmul.f32 %v690_v34, %v241_v24  ;;  %s1148_s8 = sshll.u32 %s202_s6, 3 }
  0x8b   : > { %v781_v37 = vpop.permute.xlu0 %780  ;;  %s204_s23 = scalar_lea.vmem [#allocation2], %s1148_s8 }
  0x8c   : > { %v783_v40 = vmul.f32 %v781_v37, %v1561_v21  ;;  %v784_v41 = vmul.f32 %v781_v37, %v241_v24  ;;  %s1070_s27 = sshll.u32 %s204_s23, 4  ;;  %s1668_s27 = int_to_ptr.vmem [resolvable:$true] %s1070_s27 }
  0x8d   : > { %v956_v38 = vpop.permute.xlu1 %955  ;;  %s1331_s30 = scalar_lea.vmem %s1668_s27, 128 }
  0x8e   : > { %531 = vrot.lane.b32.xlu1 %v524_v33, %s1430_s24  ;;  %529 = vrot.lane.b32.xlu0 %v523_v32, %s1430_s24  ;;  %v958_v46 = vmul.f32 %v956_v38, %v1561_v21  ;;  %v959_v47 = vmul.f32 %v956_v38, %v241_v24  ;;  %p1332_p13 = scmp.ne.s32.totalorder %s1668_s27, %s1331_s30 }
  0x90   : > { %p1333_p0 = pnand %p1332_p13, %p1515_p3 }
  0x92   : > { %700 = vrot.lane.b32.xlu1 %v693_v36, %s1428_s13  ;;  %698 = vrot.lane.b32.xlu0 %v692_v35, %s1428_s13  ;;  %p1334_p1 = pneg %p1333_p0 }
  0x95   : > { %v260_v42 = vpop.permute.xlu1 %259  ;;  %v258_v43 = vpop.permute.xlu0 %257 }
  0x96   : > { %v262_v45 = vsel %vm261_vm4, %v258_v43, %v260_v42  ;;  %791 = vrot.lane.b32.xlu1 %v784_v41, %s1429_s14  ;;  %789 = vrot.lane.b32.xlu0 %v783_v40, %s1429_s14  ;;  %s1438_s14 = smov [#allocation2]  }
  0x97   : > { %1204 = vmatpush3.msk.msra.mxu0 %vm267_vm5, %v262_v45  ;;  %s1335_s5 = sshll.u32 %s1438_s14, 4  ;;  %s1336_s5 = int_to_ptr.vmem [resolvable:$false] %s1335_s5 }
  0x98   : > { %1213 = vmatprep.subr.mxu0 %v1433_v20  ;;  %1206 = vmatmul.mubr.msk.f32.vlgmr.msra.gmra.mrb[0].mxu0 %vm263_vm6, %v1152_v44  ;;  %p1338_p2 = scmp.lt.s32.totalorder %s1668_s27, %s1336_s5 }
  0x99   : > { %1215 = vmatprep.mubr.msk.f32.mxu0 %vm1436_vm3, %v1433_v20  ;;  %v876_v49 = vpop.permute.xlu1 %875  ;;  %v874_v50 = vpop.permute.xlu0 %873 }
  0x9a   : > { %966 = vrot.lane.b32.xlu1 %v959_v47, %s1427_s10  ;;  %964 = vrot.lane.b32.xlu0 %v958_v46, %s1427_s10  ;;  %v878_v4 = vsel %vm877_vm11, %v874_v50, %v876_v49  ;;  %s1337_s10 = scalar_lea.vmem %s1336_s5, 256 }
  0x9b   : > { %p1339_p4 = scmp.lt.s32.totalorder %s1337_s10, %s1331_s30 }
  0x9d   : > { %p1340_p5 = por %p1339_p4, %p1338_p2 }
  0x9e   : > { %1049 = vperm.xlu0 %1330, %v1046_v48  }
  0x9f   : > { %p1341_p6 = pnand %p1340_p5, %p1334_p1 }
  0xf8   : > { %v345_v51 = vpop.permute.xlu1 %344  ;;  %v343_v52 = vpop.permute.xlu0 %342 }
  0xf9   : > { %v347_v54 = vsel %vm346_vm7, %v343_v52, %v345_v51 }
  0xfa   : > { %1209 = vmatpush3.msk.msra.mxu1 %vm267_vm5, %v347_v54 }
  0xfb   : > { %1211 = vmatmul.mubr.msk.f32.vlgmr.msra.gmra.mrb[0].mxu1 %vm263_vm6, %v254_v53  ;;  %1218 = vmatprep.subr.mxu1 %v1433_v20 }
  0xfc   : > { %v441_v55 = vpop.permute.xlu1 %440  ;;  %v439_v56 = vpop.permute.xlu0 %438  ;;  %1220 = vmatprep.mubr.msk.f32.mxu1 %vm1436_vm3, %v1433_v20 }
  0xfd   : > { %v443_v58 = vsel %vm442_vm8, %v439_v56, %v441_v55 }
  0xfe   : > { %1214 = vmatpush3.msk.msra.mxu0 %vm267_vm5, %v443_v58 }
  0xff   : > { %1216 = vmatmul.mubr.msk.f32.vlgmr.msra.gmra.mrb[2].mxu0 %vm263_vm6, %v1158_v57  ;;  %1223 = vmatprep.subr.mxu0 %v1433_v20 }
 0x100   : > { %v532_v59 = vpop.permute.xlu1 %531  ;;  %v530_v60 = vpop.permute.xlu0 %529  ;;  %1224 = vmatpush3.msk.msra.mxu0 %vm267_vm5, %v1561_v21  ;;  %1225 = vmatprep.mubr.msk.f32.mxu0 %vm1436_vm3, %v1433_v20 }
 0x101   : > { %v534_v62 = vsel %vm533_vm9, %v530_v60, %v532_v59  ;;  %1233 = vmatprep.subr.mxu0 %v1433_v20 }
 0x102   : > { %1219 = vmatpush3.msk.msra.mxu1 %vm267_vm5, %v534_v62 }
 0x103   : > { %1221 = vmatmul.mubr.msk.f32.vlgmr.msra.gmra.mrb[2].mxu1 %vm263_vm6, %v1161_v61  ;;  %1228 = vmatprep.subr.mxu1 %v1433_v20 }
 0x104   : > { %v701_v0 = vpop.permute.xlu1 %700  ;;  %v699_v1 = vpop.permute.xlu0 %698  ;;  %1230 = vmatprep.mubr.msk.f32.mxu1 %vm1436_vm3, %v1433_v20  ;;  %1226 = vmatmul.mubr.msk.f32.vlgmr.msra.gmra.mrb[4].mxu0 %vm263_vm6, %v1164_v63 }
 0x105   : > { %v703_v3 = vsel %vm702_vm10, %v699_v1, %v701_v0  ;;  %1235 = vmatprep.mubr.msk.f32.mxu0 %vm1436_vm3, %v1433_v20 }
 0x106   : > { %1229 = vmatpush3.msk.msra.mxu1 %vm267_vm5, %v703_v3 }
 0x107   : > { %1238 = vmatprep.subr.mxu1 %v1433_v20  ;;  %1231 = vmatmul.mubr.msk.f32.vlgmr.msra.gmra.mrb[4].mxu1 %vm263_vm6, %v1167_v2 }
 0x108   : > { %v792_v5 = vpop.permute.xlu1 %791  ;;  %1239 = vmatpush3.msk.msra.mxu1 %vm267_vm5, %v878_v4  ;;  %v790_v6 = vpop.permute.xlu0 %789  ;;  %1240 = vmatprep.mubr.msk.f32.mxu1 %vm1436_vm3, %v1433_v20 }
 0x109   : > { %v794_v8 = vsel %vm793_vm12, %v790_v6, %v792_v5 }
 0x10a   : > { %1234 = vmatpush3.msk.msra.mxu0 %vm267_vm5, %v794_v8 }
 0x10b   : > { %1236 = vmatmul.mubr.msk.f32.vlgmr.msra.gmra.mrb[6].mxu0 %vm263_vm6, %v1170_v7  ;;  %1243 = vmatprep.subr.mxu0 %v1433_v20 }
 0x10c   : > { %v967_v10 = vpop.permute.xlu1 %966  ;;  %v965_v11 = vpop.permute.xlu0 %964  ;;  %1241 = vmatmul.mubr.msk.f32.vlgmr.msra.gmra.mrb[6].mxu1 %vm263_vm6, %v1173_v9  ;;  %1245 = vmatprep.mubr.msk.f32.mxu0 %vm1436_vm3, %v1433_v20 }
 0x10d   : > { %v969_v13 = vsel %vm968_vm13, %v965_v11, %v967_v10 }
 0x10e   : > { %1244 = vmatpush3.msk.msra.mxu0 %vm267_vm5, %v969_v13 }
 0x10f   : > { %1246 = vmatmul.mubr.msk.f32.vlgmr.msra.gmra.mrb[8].mxu0 %vm263_vm6, %v1176_v12 }
 0x11d   : > { %v1050_v38 = vpop.permute.xlu0 %1049 }
 0x16b   : > { %v336_v14 = vpop.f32.mrb[0].mxu0 }
 0x16c   : > { %v1207_v15 = vpop.f32.mrb[1].mxu0 }
 0x1ce   : > { %v419_v16 = vpop.f32.mrb[0].mxu1 }
 0x1cf   : > { %v420_v17 = vadd.f32 %v419_v16, %v336_v14  ;;  %v1212_v18 = vpop.f32.mrb[1].mxu1 }
 0x1d2   : > { %v515_v19 = vpop.f32.mrb[2].mxu0 }
 0x1d3   : > { %v519_v21 = vadd.f32 %v515_v19, %v420_v17  ;;  %v1217_v22 = vpop.f32.mrb[3].mxu0 }
 0x1d6   : > { %v606_v20 = vpop.f32.mrb[2].mxu1 }
 0x1d7   : > { %v610_v23 = vadd.f32 %v606_v20, %v519_v21  ;;  %v1222_v24 = vpop.f32.mrb[3].mxu1  ;;  %v684_v25 = vpop.f32.mrb[4].mxu0 }
 0x1d8   : > { %v1227_v26 = vpop.f32.mrb[5].mxu0 }
 0x1d9   : > { %v688_v27 = vadd.f32 %v684_v25, %v610_v23 }
 0x1da   : > { %v775_v28 = vpop.f32.mrb[4].mxu1 }
 0x1db   : > { %v779_v29 = vadd.f32 %v775_v28, %v688_v27  ;;  %v1232_v30 = vpop.f32.mrb[5].mxu1 }
 0x1de   : > { %v866_v31 = vpop.f32.mrb[6].mxu0 }
 0x1df   : > { %v870_v32 = vadd.f32 %v866_v31, %v779_v29  ;;  %v1237_v33 = vpop.f32.mrb[7].mxu0  ;;  %v950_v34 = vpop.f32.mrb[6].mxu1 }
 0x1e0   : > { %v1242_v35 = vpop.f32.mrb[7].mxu1 }
 0x1e1   : > { %v954_v36 = vadd.f32 %v950_v34, %v870_v32 }
 0x1e2   : > { %v1041_v37 = vpop.f32.mrb[8].mxu0 }
 0x1e3   : > { %v1045_v39 = vadd.f32 %v1041_v37, %v954_v36  ;;  %v1247_v40 = vpop.f32.mrb[9].mxu0 }
 0x1e5   : > { %v1052_v41 = vadd.f32 %v1050_v38, %v1045_v39 }
 0x1e7   : > { %1053 = vst [vmem:[%s204_s23] sm:$0xff] %v1052_v41 }
 0x1e8   : > { %1344 = shalt.err (!%p1341_p6)
}
 0x1e9   : > { %s1345_s6 = scalar_lea.hbm %s1666_s19, 128  ;;  %s1349_s11 = scalar_lea.hbm %s1723_s4, 512 }
 0x1ea   : > { %p1346_p7 = scmp.ne.s32.totalorder %s1666_s19, %s1345_s6  ;;  %p1350_p11 = scmp.lt.u32.totalorder %s1666_s19, %s1723_s4 }
 0x1eb   : > { %p1351_p12 = scmp.lt.u32.totalorder %s1349_s11, %s1345_s6  ;;  %p1353_p0 = scmp.lt.u32.totalorder %s1345_s6, %s1666_s19 }
 0x1ec   : > { %p1347_p9 = pnand %p1346_p7, %p1515_p3 }
 0x1ed   : > { %p1352_p13 = por %p1351_p12, %p1350_p11 }
 0x1ee   : > { %p1348_p10 = pneg %p1347_p9 }
 0x1ef   : > { %p1354_p1 = por %p1353_p0, %p1352_p13 }
 0x1f1   : > { %p1355_p2 = pnand %p1354_p1, %p1348_p10 }
 0x1f3   : > { %1358 = shalt.err (!%p1355_p2)
}
 0x1f4   : > { %1248 = dma.vmem_to_hbm [thread:$0]  (%p1515_p3), %s1668_s27, 128, %s1666_s19, %s1055_s18  }
 0x1f5 PF: > { %p1254_p4 = scmp.ge.s32.totalorder %s1425_s22, 2  ;;  %s1082_s24 = sand.u32 1, %s1397_s15  }
 0x1f6   : > { %s1083_s13 = scalar_lea.sflag [#allocation3], %s1082_s24 }
 0x1f7   : > { %p1251_p5 = pnand %p1254_p4, %p1524_p8 }
 0x1f9   : > { %1392 = dma.done.wait (!%p1251_p5), %s1083_s13, 128  }
 0x1fa   : > { %1394 = vsyncadd (!%p1251_p5), %s1083_s13, 4294967168  ;;  %s17_s22 = sadd.s32 1, %s1425_s22   ;;  %s1726_s15 = smov %s1401_s16 }
 0x1fb   : > { %p14_p6 = scmp.ge.s32.totalorder %s17_s22, 6   ;;  %s1727_s16 = smov %s1405_s17 }
 0x1fc   : > { %s1728_s17 = smov %s1533_s7  ;;  %s1729_s18 = smov %s1417_s20 }
 0x1fd   : > { %s1730_s19 = smov %s1421_s21  ;;  %s1731_s20 = smov %s1734_s25 }
 0x1fe   : > { %s1732_s21 = smov %s1738_s26  ;;  %16 = sbr.rel (!%p14_p6) target bundleno = 5 (0x5), region = 80 }
 0x205   :  { %1088 = vsyncpa [#allocation3], 1 }
 0x206   :  { %1090 = vsyncpa [#allocation3 + $0x1], 1 }

</bundles_post_ra>
